<compile_context>
chip_gen: v7x
topology: tpu7x:2x2x1
jax: 0.10.0
libtpu: 0.0.40
codegen_flags: <defaults>
</compile_context>

<pallas_src>
import jax
import jax.numpy as jnp
from jax import lax
from jax.experimental import pallas as pl
from jax.experimental.pallas import tpu as pltpu


def _round_up(x: int, m: int) -> int:
    return ((x + m - 1) // m) * m


def make_mlp_kernel(num_layers: int, out_classes: int):
    """Fused kernel. Ref order: (x_ref, w0, b0, ..., w_{L-1}, b_{L-1}, o_ref).

    ReLU after every layer except the last; masked softmax over the last axis
    (padded class columns are excluded from the softmax and written as 0).
    """

    def kernel(*refs):
        x_ref = refs[0]
        o_ref = refs[-1]
        param_refs = refs[1:-1]

        h = x_ref[...]
        for l in range(num_layers):
            w = param_refs[2 * l][...]
            b = param_refs[2 * l + 1][...]          # shape (1, out_pad)
            # Keep the matmul on the weights' native MXU path (bf16 or f32),
            # accumulate in f32.
            lhs = h if h.dtype == w.dtype else h.astype(w.dtype)
            h = jnp.dot(lhs, w, preferred_element_type=jnp.float32)
            h = h + b.astype(jnp.float32)
            if l < num_layers - 1:
                h = jnp.maximum(h, 0.0)             # ReLU on hidden layers only

        # Mask padded class columns so they contribute exactly 0 to the softmax.
        out_pad = h.shape[-1]
        if out_pad != out_classes:
            col = lax.broadcasted_iota(jnp.int32, h.shape, 1)
            h = jnp.where(col < out_classes, h, jnp.float32(-1e30))

        # softmax along the feature axis (torch dim=1 for 2-D input).
        m = jnp.max(h, axis=-1, keepdims=True)
        e = jnp.exp(h - m)                          # padded cols -> 0
        denom = jnp.sum(e, axis=-1, keepdims=True)
        # Exact divide: rows must sum to 1 (approx reciprocal was not enough).
        o_ref[...] = (e / denom).astype(o_ref.dtype)

    return kernel


def mlp_forward(x, params, *, tile_b=256, lane=128, param_dtype=None):
    """x: [B, in_features]; params: list of (W [in, out], b [1, out])."""
    B, F = x.shape
    num_layers = len(params)
    out_classes = params[-1][0].shape[1]

    # ---- pad all feature dims to lane multiples (exact through Linear+ReLU) ----
    dims = [F] + [w.shape[1] for (w, _) in params]
    pdims = [_round_up(d, lane) for d in dims]
    F_pad, out_pad = pdims[0], pdims[-1]

    # ---- hardware query (graceful fallback keeps this runnable anywhere) ----
    try:
        info = pltpu.get_tpu_info()
        vmem_cap = int(getattr(info, "vmem_capacity_bytes", 64 << 20))
        num_cores = int(getattr(info, "num_cores", 1) or 1)
    except Exception:  # e.g. interpret mode on a non-TPU host
        vmem_cap, num_cores = 64 << 20, 1
    budget = int(0.85 * vmem_cap)                  # never request > physical VMEM

    # Auto bf16 for very large resident weight matrices (v7x's 64 MiB VMEM).
    if param_dtype is None:
        max_w_bytes = max(
            pdims[l] * pdims[l + 1] * params[l][0].dtype.itemsize
            for l in range(num_layers))
        if max_w_bytes > budget // 4:
            param_dtype = jnp.bfloat16
    # TODO(synk): layers too large to stay resident even in bf16 should be
    # streamed over K/N chunks with pltpu.emit_pipeline instead of padded+resident.

    flat_params = []
    for l, (w, b) in enumerate(params):
        d_in, d_out = w.shape
        p_in, p_out = pdims[l], pdims[l + 1]
        w_p = jnp.zeros((p_in, p_out), w.dtype).at[:d_in, :d_out].set(w)
        b_p = jnp.zeros((1, p_out), b.dtype).at[:, :d_out].set(b.reshape(1, d_out))
        if param_dtype is not None:
            w_p = w_p.astype(param_dtype)
            b_p = b_p.astype(param_dtype)
        flat_params += [w_p, b_p]
    param_bytes = sum(int(p.size) * p.dtype.itemsize for p in flat_params)

    # ---- batch tiling ----
    # Use the largest tile that fits (single-TC chips want one big step);
    # on multi-core chips create >= num_cores grid steps so the "parallel"
    # batch axis can be sharded across TensorCores.
    tile_b = max(8, min(tile_b, _round_up(B, 8)))
    if num_cores > 1:
        tile_b = max(8, min(tile_b, _round_up(pl.cdiv(B, num_cores), 8)))

    act_bytes = x.dtype.itemsize
    max_width = max(pdims)

    def _vmem_est(tb: int) -> int:
        est = 2 * tb * F_pad * act_bytes           # double-buffered input tile
        est += 2 * tb * out_pad * act_bytes        # double-buffered output tile
        est += param_bytes                         # resident params (single-buffered)
        est += 2 * tb * max_width * 4              # two live f32 layer activations
        return est

    while tile_b > 8 and _vmem_est(tile_b) > budget:
        tile_b = max(8, _round_up(tile_b // 2, 8))

    B_pad = _round_up(B, tile_b)
    grid = (B_pad // tile_b,)

    x_p = jnp.zeros((B_pad, F_pad), x.dtype).at[:B, :F].set(x)

    x_spec = pl.BlockSpec((tile_b, F_pad), lambda i: (i, 0))
    out_spec = pl.BlockSpec((tile_b, out_pad), lambda i: (i, 0))  # lane-dense store

    vmem_limit = int(min(max(_vmem_est(tile_b) + (8 << 20), 32 << 20), budget))

    kernel = make_mlp_kernel(num_layers, out_classes)
    out_shape = jax.ShapeDtypeStruct((B_pad, out_pad), x.dtype)
    compiler_params = pltpu.CompilerParams(
        dimension_semantics=("parallel",),
        vmem_limit_bytes=vmem_limit,
    )

    def _run(param_specs):
        return pl.pallas_call(
            kernel,
            out_shape=out_shape,
            grid=grid,
            in_specs=[x_spec] + param_specs,
            out_specs=out_spec,
            compiler_params=compiler_params,
        )(x_p, *flat_params)

    try:
        # Params are grid-invariant -> single-buffer them (halves their VMEM).
        param_specs = [
            pl.BlockSpec(p.shape, lambda i: (0, 0), pipeline_mode=pl.Buffered(1))
            for p in flat_params
        ]
        out_full = _run(param_specs)
    except Exception:
        # Fallback for environments without pipeline_mode support.
        param_specs = [pl.BlockSpec(p.shape, lambda i: (0, 0)) for p in flat_params]
        out_full = _run(param_specs)

    # slice away batch padding and padded (zeroed) class columns
    return out_full[:B, :out_classes]


def init_mlp_params(key, in_features, out_classes, hidden_layers):
    """Deterministic init mimicking torch.nn.Linear default (U(-k, k), k=1/sqrt(fan_in))."""
    layer_sizes = [in_features] + list(hidden_layers) + [out_classes]
    params = []
    for i in range(len(layer_sizes) - 1):
        fan_in, fan_out = layer_sizes[i], layer_sizes[i + 1]
        key, wk, bk = jax.random.split(key, 3)
        bound = 1.0 / (fan_in ** 0.5)
        w = jax.random.uniform(wk, (fan_in, fan_out), jnp.float32, -bound, bound)
        b = jax.random.uniform(bk, (1, fan_out), jnp.float32, -bound, bound)
        params.append((w, b))
    return params


def mlp_reference(x, params):
    h = x.astype(jnp.float32)
    n = len(params)
    for l, (w, b) in enumerate(params):
        h = h @ w + b
        if l < n - 1:
            h = jnp.maximum(h, 0.0)
    return jax.nn.softmax(h, axis=1).astype(x.dtype)


if __name__ == "__main__":
    in_features = 32
    hidden_layers = [64, 48]
    out_classes = 16
    batch = 16

    key = jax.random.PRNGKey(0)
    key, xk = jax.random.split(key)
    x = jax.random.normal(xk, (batch, in_features), jnp.float32)

    params = init_mlp_params(key, in_features, out_classes, hidden_layers)

    out = mlp_forward(x, params)
    out = jax.block_until_ready(out)

    ref = mlp_reference(x, params)
    assert out.shape == (batch, out_classes)
    assert jnp.allclose(out, ref, atol=1e-4, rtol=1e-4), "mismatch vs reference"
    assert jnp.allclose(jnp.sum(out, axis=1), 1.0, atol=1e-5), "softmax rows must sum to 1"

    print("KERNEL_OK")
</pallas_src>

<mosaic_0001>
module attributes {stable_mosaic.version = 11 : i64} {
  func.func @kernel(%arg0: i32, %arg1: memref<16x128xf32, #tpu.memory_space<vmem>>, %arg2: memref<128x128xf32, #tpu.memory_space<vmem>>, %arg3: memref<1x128xf32, #tpu.memory_space<vmem>>, %arg4: memref<128x128xf32, #tpu.memory_space<vmem>>, %arg5: memref<1x128xf32, #tpu.memory_space<vmem>>, %arg6: memref<128x128xf32, #tpu.memory_space<vmem>>, %arg7: memref<1x128xf32, #tpu.memory_space<vmem>>, %arg8: memref<16x128xf32, #tpu.memory_space<vmem>>) attributes {dimension_semantics = [#tpu.dimension_semantics<parallel>], iteration_bounds = array<i64: 1>, scalar_prefetch = 0 : i64, scratch_operands = 0 : i64, tpu.core_type = #tpu.core_type<tc>, window_params = [{transform_indices = @transform_0, window_bounds = array<i64: 16, 128>}, {pipeline_mode = #tpu.pipeline_mode<synchronous>, transform_indices = @transform_1, window_bounds = array<i64: 128, 128>}, {pipeline_mode = #tpu.pipeline_mode<synchronous>, transform_indices = @transform_2, window_bounds = array<i64: 1, 128>}, {pipeline_mode = #tpu.pipeline_mode<synchronous>, transform_indices = @transform_3, window_bounds = array<i64: 128, 128>}, {pipeline_mode = #tpu.pipeline_mode<synchronous>, transform_indices = @transform_4, window_bounds = array<i64: 1, 128>}, {pipeline_mode = #tpu.pipeline_mode<synchronous>, transform_indices = @transform_5, window_bounds = array<i64: 128, 128>}, {pipeline_mode = #tpu.pipeline_mode<synchronous>, transform_indices = @transform_6, window_bounds = array<i64: 1, 128>}, {transform_indices = @transform_7, window_bounds = array<i64: 16, 128>}]} {
    %c0 = arith.constant 0 : index
    %c0_0 = arith.constant 0 : index
    %0 = vector.load %arg1[%c0, %c0_0] : memref<16x128xf32, #tpu.memory_space<vmem>>, vector<16x128xf32>
    %c0_1 = arith.constant 0 : index
    %c0_2 = arith.constant 0 : index
    %1 = vector.load %arg2[%c0_1, %c0_2] : memref<128x128xf32, #tpu.memory_space<vmem>>, vector<128x128xf32>
    %c0_3 = arith.constant 0 : index
    %c0_4 = arith.constant 0 : index
    %2 = vector.load %arg3[%c0_3, %c0_4] : memref<1x128xf32, #tpu.memory_space<vmem>>, vector<1x128xf32>
    %cst = arith.constant dense<0.000000e+00> : vector<16x128xf32>
    %3 = tpu.matmul %0, %1, %cst {dimension_numbers = #tpu.dot_dimension_numbers<[1], [0], [0], [1], [0, 0, 1, 1], [], []>} : vector<16x128xf32>, vector<128x128xf32>, vector<16x128xf32> -> vector<16x128xf32>
    %4 = vector.broadcast %2 : vector<1x128xf32> to vector<16x128xf32>
    %5 = arith.addf %3, %4 : vector<16x128xf32>
    %cst_5 = arith.constant 0.000000e+00 : f32
    %6 = vector.broadcast %cst_5 : f32 to vector<16x128xf32>
    %7 = arith.maximumf %5, %6 : vector<16x128xf32>
    %c0_6 = arith.constant 0 : index
    %c0_7 = arith.constant 0 : index
    %8 = vector.load %arg4[%c0_6, %c0_7] : memref<128x128xf32, #tpu.memory_space<vmem>>, vector<128x128xf32>
    %c0_8 = arith.constant 0 : index
    %c0_9 = arith.constant 0 : index
    %9 = vector.load %arg5[%c0_8, %c0_9] : memref<1x128xf32, #tpu.memory_space<vmem>>, vector<1x128xf32>
    %cst_10 = arith.constant dense<0.000000e+00> : vector<16x128xf32>
    %10 = tpu.matmul %7, %8, %cst_10 {dimension_numbers = #tpu.dot_dimension_numbers<[1], [0], [0], [1], [0, 0, 1, 1], [], []>} : vector<16x128xf32>, vector<128x128xf32>, vector<16x128xf32> -> vector<16x128xf32>
    %11 = vector.broadcast %9 : vector<1x128xf32> to vector<16x128xf32>
    %12 = arith.addf %10, %11 : vector<16x128xf32>
    %cst_11 = arith.constant 0.000000e+00 : f32
    %13 = vector.broadcast %cst_11 : f32 to vector<16x128xf32>
    %14 = arith.maximumf %12, %13 : vector<16x128xf32>
    %c0_12 = arith.constant 0 : index
    %c0_13 = arith.constant 0 : index
    %15 = vector.load %arg6[%c0_12, %c0_13] : memref<128x128xf32, #tpu.memory_space<vmem>>, vector<128x128xf32>
    %c0_14 = arith.constant 0 : index
    %c0_15 = arith.constant 0 : index
    %16 = vector.load %arg7[%c0_14, %c0_15] : memref<1x128xf32, #tpu.memory_space<vmem>>, vector<1x128xf32>
    %cst_16 = arith.constant dense<0.000000e+00> : vector<16x128xf32>
    %17 = tpu.matmul %14, %15, %cst_16 {dimension_numbers = #tpu.dot_dimension_numbers<[1], [0], [0], [1], [0, 0, 1, 1], [], []>} : vector<16x128xf32>, vector<128x128xf32>, vector<16x128xf32> -> vector<16x128xf32>
    %18 = vector.broadcast %16 : vector<1x128xf32> to vector<16x128xf32>
    %19 = arith.addf %17, %18 : vector<16x128xf32>
    %20 = tpu.iota {dimensions = array<i32: 1>} : vector<16x128xi32>
    %c16_i32 = arith.constant 16 : i32
    %21 = vector.broadcast %c16_i32 : i32 to vector<16x128xi32>
    %22 = arith.cmpi slt, %20, %21 : vector<16x128xi32>
    %cst_17 = arith.constant -1.000000e+30 : f32
    %23 = vector.broadcast %cst_17 : f32 to vector<16x128xf32>
    %24 = arith.select %22, %19, %23 : vector<16x128xi1>, vector<16x128xf32>
    %cst_18 = arith.constant dense<0xFF800000> : vector<16xf32>
    %25 = vector.multi_reduction <maximumf>, %24, %cst_18 [1] : vector<16x128xf32> to vector<16xf32>
    %26 = vector.shape_cast %25 : vector<16xf32> to vector<16x1xf32>
    %27 = vector.broadcast %26 : vector<16x1xf32> to vector<16x128xf32>
    %28 = arith.subf %24, %27 : vector<16x128xf32>
    %29 = math.exp %28 : vector<16x128xf32>
    %cst_19 = arith.constant dense<0.000000e+00> : vector<16xf32>
    %30 = vector.multi_reduction <add>, %29, %cst_19 [1] : vector<16x128xf32> to vector<16xf32>
    %31 = vector.shape_cast %30 : vector<16xf32> to vector<16x1xf32>
    %32 = vector.broadcast %31 : vector<16x1xf32> to vector<16x128xf32>
    %33 = arith.divf %29, %32 : vector<16x128xf32>
    %c0_20 = arith.constant 0 : index
    %c0_21 = arith.constant 0 : index
    %34 = vector.load %arg8[%c0_20, %c0_21] : memref<16x128xf32, #tpu.memory_space<vmem>>, vector<16x128xf32>
    tpu.vector_store %arg8[%c0_20, %c0_21], %33 {strides = array<i32>} : memref<16x128xf32, #tpu.memory_space<vmem>>, vector<16x128xf32>,
    return
  }
  func.func @transform_0(%arg0: i32) -> (i32, i32) {
    %c0_i32 = arith.constant 0 : i32
    %c0_i32_0 = arith.constant 0 : i32
    return %arg0, %c0_i32 : i32, i32
  }
  func.func @transform_1(%arg0: i32) -> (i32, i32) {
    %c0_i32 = arith.constant 0 : i32
    %c0_i32_0 = arith.constant 0 : i32
    %c0_i32_1 = arith.constant 0 : i32
    return %c0_i32, %c0_i32_0 : i32, i32
  }
  func.func @transform_2(%arg0: i32) -> (i32, i32) {
    %c0_i32 = arith.constant 0 : i32
    %c0_i32_0 = arith.constant 0 : i32
    %c0_i32_1 = arith.constant 0 : i32
    return %c0_i32, %c0_i32_0 : i32, i32
  }
  func.func @transform_3(%arg0: i32) -> (i32, i32) {
    %c0_i32 = arith.constant 0 : i32
    %c0_i32_0 = arith.constant 0 : i32
    %c0_i32_1 = arith.constant 0 : i32
    return %c0_i32, %c0_i32_0 : i32, i32
  }
  func.func @transform_4(%arg0: i32) -> (i32, i32) {
    %c0_i32 = arith.constant 0 : i32
    %c0_i32_0 = arith.constant 0 : i32
    %c0_i32_1 = arith.constant 0 : i32
    return %c0_i32, %c0_i32_0 : i32, i32
  }
  func.func @transform_5(%arg0: i32) -> (i32, i32) {
    %c0_i32 = arith.constant 0 : i32
    %c0_i32_0 = arith.constant 0 : i32
    %c0_i32_1 = arith.constant 0 : i32
    return %c0_i32, %c0_i32_0 : i32, i32
  }
  func.func @transform_6(%arg0: i32) -> (i32, i32) {
    %c0_i32 = arith.constant 0 : i32
    %c0_i32_0 = arith.constant 0 : i32
    %c0_i32_1 = arith.constant 0 : i32
    return %c0_i32, %c0_i32_0 : i32, i32
  }
  func.func @transform_7(%arg0: i32) -> (i32, i32) {
    %c0_i32 = arith.constant 0 : i32
    %c0_i32_0 = arith.constant 0 : i32
    return %arg0, %c0_i32 : i32, i32
  }
}

module attributes {stable_mosaic.version = 11 : i64} {
  func.func @kernel(%arg0: i32, %arg1: memref<16x128xf32, #tpu.memory_space<vmem>>, %arg2: memref<128x128xf32, #tpu.memory_space<vmem>>, %arg3: memref<1x128xf32, #tpu.memory_space<vmem>>, %arg4: memref<128x128xf32, #tpu.memory_space<vmem>>, %arg5: memref<1x128xf32, #tpu.memory_space<vmem>>, %arg6: memref<128x128xf32, #tpu.memory_space<vmem>>, %arg7: memref<1x128xf32, #tpu.memory_space<vmem>>, %arg8: memref<16x128xf32, #tpu.memory_space<vmem>>) attributes {dimension_semantics = [#tpu.dimension_semantics<parallel>], iteration_bounds = array<i64: 1>, scalar_prefetch = 0 : i64, scratch_operands = 0 : i64, tpu.core_type = #tpu.core_type<tc>, window_params = [{transform_indices = @transform_0, window_bounds = array<i64: 16, 128>}, {pipeline_mode = #tpu.pipeline_mode<synchronous>, transform_indices = @transform_1, window_bounds = array<i64: 128, 128>}, {pipeline_mode = #tpu.pipeline_mode<synchronous>, transform_indices = @transform_2, window_bounds = array<i64: 1, 128>}, {pipeline_mode = #tpu.pipeline_mode<synchronous>, transform_indices = @transform_3, window_bounds = array<i64: 128, 128>}, {pipeline_mode = #tpu.pipeline_mode<synchronous>, transform_indices = @transform_4, window_bounds = array<i64: 1, 128>}, {pipeline_mode = #tpu.pipeline_mode<synchronous>, transform_indices = @transform_5, window_bounds = array<i64: 128, 128>}, {pipeline_mode = #tpu.pipeline_mode<synchronous>, transform_indices = @transform_6, window_bounds = array<i64: 1, 128>}, {transform_indices = @transform_7, window_bounds = array<i64: 16, 128>}]} {
    %c0 = arith.constant 0 : index
    %c0_0 = arith.constant 0 : index
    %0 = vector.load %arg1[%c0, %c0_0] : memref<16x128xf32, #tpu.memory_space<vmem>>, vector<16x128xf32>
    %c0_1 = arith.constant 0 : index
    %c0_2 = arith.constant 0 : index
    %1 = vector.load %arg2[%c0_1, %c0_2] : memref<128x128xf32, #tpu.memory_space<vmem>>, vector<128x128xf32>
    %c0_3 = arith.constant 0 : index
    %c0_4 = arith.constant 0 : index
    %2 = vector.load %arg3[%c0_3, %c0_4] : memref<1x128xf32, #tpu.memory_space<vmem>>, vector<1x128xf32>
    %cst = arith.constant dense<0.000000e+00> : vector<16x128xf32>
    %3 = tpu.matmul %0, %1, %cst {dimension_numbers = #tpu.dot_dimension_numbers<[1], [0], [0], [1], [0, 0, 1, 1], [], []>} : vector<16x128xf32>, vector<128x128xf32>, vector<16x128xf32> -> vector<16x128xf32>
    %4 = vector.broadcast %2 : vector<1x128xf32> to vector<16x128xf32>
    %5 = arith.addf %3, %4 : vector<16x128xf32>
    %cst_5 = arith.constant 0.000000e+00 : f32
    %6 = vector.broadcast %cst_5 : f32 to vector<16x128xf32>
    %7 = arith.maximumf %5, %6 : vector<16x128xf32>
    %c0_6 = arith.constant 0 : index
    %c0_7 = arith.constant 0 : index
    %8 = vector.load %arg4[%c0_6, %c0_7] : memref<128x128xf32, #tpu.memory_space<vmem>>, vector<128x128xf32>
    %c0_8 = arith.constant 0 : index
    %c0_9 = arith.constant 0 : index
    %9 = vector.load %arg5[%c0_8, %c0_9] : memref<1x128xf32, #tpu.memory_space<vmem>>, vector<1x128xf32>
    %cst_10 = arith.constant dense<0.000000e+00> : vector<16x128xf32>
    %10 = tpu.matmul %7, %8, %cst_10 {dimension_numbers = #tpu.dot_dimension_numbers<[1], [0], [0], [1], [0, 0, 1, 1], [], []>} : vector<16x128xf32>, vector<128x128xf32>, vector<16x128xf32> -> vector<16x128xf32>
    %11 = vector.broadcast %9 : vector<1x128xf32> to vector<16x128xf32>
    %12 = arith.addf %10, %11 : vector<16x128xf32>
    %cst_11 = arith.constant 0.000000e+00 : f32
    %13 = vector.broadcast %cst_11 : f32 to vector<16x128xf32>
    %14 = arith.maximumf %12, %13 : vector<16x128xf32>
    %c0_12 = arith.constant 0 : index
    %c0_13 = arith.constant 0 : index
    %15 = vector.load %arg6[%c0_12, %c0_13] : memref<128x128xf32, #tpu.memory_space<vmem>>, vector<128x128xf32>
    %c0_14 = arith.constant 0 : index
    %c0_15 = arith.constant 0 : index
    %16 = vector.load %arg7[%c0_14, %c0_15] : memref<1x128xf32, #tpu.memory_space<vmem>>, vector<1x128xf32>
    %cst_16 = arith.constant dense<0.000000e+00> : vector<16x128xf32>
    %17 = tpu.matmul %14, %15, %cst_16 {dimension_numbers = #tpu.dot_dimension_numbers<[1], [0], [0], [1], [0, 0, 1, 1], [], []>} : vector<16x128xf32>, vector<128x128xf32>, vector<16x128xf32> -> vector<16x128xf32>
    %18 = vector.broadcast %16 : vector<1x128xf32> to vector<16x128xf32>
    %19 = arith.addf %17, %18 : vector<16x128xf32>
    %20 = tpu.iota {dimensions = array<i32: 1>} : vector<16x128xi32>
    %c16_i32 = arith.constant 16 : i32
    %21 = vector.broadcast %c16_i32 : i32 to vector<16x128xi32>
    %22 = arith.cmpi slt, %20, %21 : vector<16x128xi32>
    %cst_17 = arith.constant -1.000000e+30 : f32
    %23 = vector.broadcast %cst_17 : f32 to vector<16x128xf32>
    %24 = arith.select %22, %19, %23 : vector<16x128xi1>, vector<16x128xf32>
    %cst_18 = arith.constant dense<0xFF800000> : vector<16xf32>
    %25 = vector.multi_reduction <maximumf>, %24, %cst_18 [1] : vector<16x128xf32> to vector<16xf32>
    %26 = vector.shape_cast %25 : vector<16xf32> to vector<16x1xf32>
    %27 = vector.broadcast %26 : vector<16x1xf32> to vector<16x128xf32>
    %28 = arith.subf %24, %27 : vector<16x128xf32>
    %29 = math.exp %28 : vector<16x128xf32>
    %cst_19 = arith.constant dense<0.000000e+00> : vector<16xf32>
    %30 = vector.multi_reduction <add>, %29, %cst_19 [1] : vector<16x128xf32> to vector<16xf32>
    %31 = vector.shape_cast %30 : vector<16xf32> to vector<16x1xf32>
    %32 = vector.broadcast %31 : vector<16x1xf32> to vector<16x128xf32>
    %33 = arith.divf %29, %32 : vector<16x128xf32>
    %c0_20 = arith.constant 0 : index
    %c0_21 = arith.constant 0 : index
    %34 = vector.load %arg8[%c0_20, %c0_21] : memref<16x128xf32, #tpu.memory_space<vmem>>, vector<16x128xf32>
    tpu.vector_store %arg8[%c0_20, %c0_21], %33 {strides = array<i32>} : memref<16x128xf32, #tpu.memory_space<vmem>>, vector<16x128xf32>,
    return
  }
  func.func @transform_0(%arg0: i32) -> (i32, i32) {
    %c0_i32 = arith.constant 0 : i32
    %c0_i32_0 = arith.constant 0 : i32
    return %arg0, %c0_i32 : i32, i32
  }
  func.func @transform_1(%arg0: i32) -> (i32, i32) {
    %c0_i32 = arith.constant 0 : i32
    %c0_i32_0 = arith.constant 0 : i32
    %c0_i32_1 = arith.constant 0 : i32
    return %c0_i32, %c0_i32_0 : i32, i32
  }
  func.func @transform_2(%arg0: i32) -> (i32, i32) {
    %c0_i32 = arith.constant 0 : i32
    %c0_i32_0 = arith.constant 0 : i32
    %c0_i32_1 = arith.constant 0 : i32
    return %c0_i32, %c0_i32_0 : i32, i32
  }
  func.func @transform_3(%arg0: i32) -> (i32, i32) {
    %c0_i32 = arith.constant 0 : i32
    %c0_i32_0 = arith.constant 0 : i32
    %c0_i32_1 = arith.constant 0 : i32
    return %c0_i32, %c0_i32_0 : i32, i32
  }
  func.func @transform_4(%arg0: i32) -> (i32, i32) {
    %c0_i32 = arith.constant 0 : i32
    %c0_i32_0 = arith.constant 0 : i32
    %c0_i32_1 = arith.constant 0 : i32
    return %c0_i32, %c0_i32_0 : i32, i32
  }
  func.func @transform_5(%arg0: i32) -> (i32, i32) {
    %c0_i32 = arith.constant 0 : i32
    %c0_i32_0 = arith.constant 0 : i32
    %c0_i32_1 = arith.constant 0 : i32
    return %c0_i32, %c0_i32_0 : i32, i32
  }
  func.func @transform_6(%arg0: i32) -> (i32, i32) {
    %c0_i32 = arith.constant 0 : i32
    %c0_i32_0 = arith.constant 0 : i32
    %c0_i32_1 = arith.constant 0 : i32
    return %c0_i32, %c0_i32_0 : i32, i32
  }
  func.func @transform_7(%arg0: i32) -> (i32, i32) {
    %c0_i32 = arith.constant 0 : i32
    %c0_i32_0 = arith.constant 0 : i32
    return %arg0, %c0_i32 : i32, i32
  }
}

</mosaic_0001>

<bundles_post_ra>
// kernel: tpu_custom_call.1
= control target key start
LH: loop header
LB: loop body
LE: loop exit
PB: predicated region body
PF: predicated region fallthrough
CT: control target
= control target key end

     0   :  { %12 = vsyncpa [#allocation3], 0  ;;  %s962_s0 = inlined_call_operand.hbm [shape: f32[16,128], index: 0, kind: input, shape index: {}]   ;;  %s963_s1 = inlined_call_operand.hbm [shape: f32[128,128], index: 1, kind: input, shape index: {}]   ;;  %s964_s2 = inlined_call_operand.vmem [shape: f32[1,128], index: 2, kind: input, shape index: {}]   ;;  %s965_s3 = inlined_call_operand.hbm [shape: f32[128,128], index: 3, kind: input, shape index: {}]   ;;  %s966_s4 = inlined_call_operand.vmem [shape: f32[1,128], index: 4, kind: input, shape index: {}]   ;;  %s967_s5 = inlined_call_operand.hbm [shape: f32[128,128], index: 5, kind: input, shape index: {}]   ;;  %s968_s6 = inlined_call_operand.vmem [shape: f32[1,128], index: 6, kind: input, shape index: {}]   ;;  %s969_s7 = inlined_call_operand.hbm [shape: f32[16,128], index: 7, kind: output, shape index: {}]  }
   0x1   :  { %13 = vsyncpa [#allocation6], 0 }
   0x2   :  { %14 = vsyncpa [#allocation9], 0 }
   0x3   :  { %15 = vsyncpa [#allocation4], 0  ;;  %s817_s24 = smov [#allocation5]   ;;  %s818_s26 = smov [#allocation2]  }
   0x4   :  { %s33_s25 = sshll.u32 %s817_s24, 4  ;;  %s21_s27 = sshll.u32 %s818_s26, 4  ;;  %s34_s25 = int_to_ptr.vmem [resolvable:$true] %s33_s25  ;;  %s864_s27 = int_to_ptr.vmem [resolvable:$true] %s21_s27 }
   0x5   :  { %s699_s30 = scalar_lea.hbm %s963_s1, 2048 }
   0x6   :  { %p700_p0 = scmp.ne.s32.totalorder %s963_s1, %s699_s30  ;;  %p703_p1 = scmp.lt.u32.totalorder %s699_s30, %s963_s1 }
   0x8   :  { %p705_p2 = pnand %p703_p1, %p700_p0 }
   0xa   :  { %708 = shalt.err (!%p705_p2)
}
   0xb   :  { %s709_s12 = scalar_lea.vmem %s34_s25, 2048  ;;  %p714_p4 = scmp.lt.s32.totalorder %s34_s25, %s34_s25 }
   0xc   :  { %p710_p3 = scmp.ne.s32.totalorder %s34_s25, %s709_s12  ;;  %p715_p5 = scmp.lt.s32.totalorder %s709_s12, %s709_s12 }
   0xe   :  { %p716_p6 = por %p715_p5, %p714_p4 }
  0x10   :  { %p717_p7 = pnand %p716_p6, %p710_p3 }
  0x12   :  { %720 = shalt.err (!%p717_p7)
}
  0x13   :  { %s819_s13 = smov 128   ;;  %s820_s14 = smov 8  }
  0x14   :  { %39 = dma.hbm_to_vmem [thread:$0]  %s963_s1, 2048, %s34_s25, [#allocation6], %s819_s13, %s819_s13, %s820_s14  }
  0x15   :  { %s721_s19 = scalar_lea.hbm %s962_s0, 256 }
  0x16   :  { %p722_p8 = scmp.ne.s32.totalorder %s962_s0, %s721_s19  ;;  %p725_p9 = scmp.lt.u32.totalorder %s721_s19, %s962_s0 }
  0x18   :  { %p727_p10 = pnand %p725_p9, %p722_p8 }
  0x1a   :  { %730 = shalt.err (!%p727_p10)
}
  0x1b   :  { %s731_s24 = scalar_lea.vmem %s864_s27, 256  ;;  %p736_p12 = scmp.lt.s32.totalorder %s864_s27, %s864_s27 }
  0x1c   :  { %p732_p11 = scmp.ne.s32.totalorder %s864_s27, %s731_s24  ;;  %p737_p13 = scmp.lt.s32.totalorder %s731_s24, %s731_s24 }
  0x1e   :  { %p738_p0 = por %p737_p13, %p736_p12 }
  0x20   :  { %p739_p1 = pnand %p738_p0, %p732_p11 }
  0x22   :  { %742 = shalt.err (!%p739_p1)
}
  0x23   :  { %27 = dma.hbm_to_vmem [thread:$0]  %s962_s0, 256, %s864_s27, [#allocation3], %s819_s13, %s819_s13, %s820_s14  }
  0x24   :  { %s821_s26 = smov [#allocation7]   ;;  %s822_s29 = smov [#allocation8]  }
  0x25   :  { %s47_s28 = sshll.u32 %s821_s26, 4  ;;  %s61_s30 = sshll.u32 %s822_s29, 4  ;;  %s48_s28 = int_to_ptr.vmem [resolvable:$true] %s47_s28  ;;  %s901_s30 = int_to_ptr.vmem [resolvable:$true] %s61_s30 }
  0x26   :  { %s743_s10 = scalar_lea.hbm %s965_s3, 2048 }
  0x27   :  { %p744_p2 = scmp.ne.s32.totalorder %s965_s3, %s743_s10  ;;  %p747_p3 = scmp.lt.u32.totalorder %s743_s10, %s965_s3 }
  0x29   :  { %p749_p4 = pnand %p747_p3, %p744_p2 }
  0x2b   :  { %752 = shalt.err (!%p749_p4)
}
  0x2c   :  { %s753_s0 = scalar_lea.vmem %s48_s28, 2048  ;;  %p758_p6 = scmp.lt.s32.totalorder %s48_s28, %s48_s28 }
  0x2d   :  { %p754_p5 = scmp.ne.s32.totalorder %s48_s28, %s753_s0  ;;  %p759_p7 = scmp.lt.s32.totalorder %s753_s0, %s753_s0 }
  0x2f   :  { %p760_p8 = por %p759_p7, %p758_p6 }
  0x31   :  { %p761_p9 = pnand %p760_p8, %p754_p5 }
  0x33   :  { %764 = shalt.err (!%p761_p9)
}
  0x34   :  { %53 = dma.hbm_to_vmem [thread:$0]  %s965_s3, 2048, %s48_s28, [#allocation6], %s819_s13, %s819_s13, %s820_s14  }
  0x35   :  { %s765_s20 = scalar_lea.hbm %s967_s5, 2048 }
  0x36   :  { %p766_p10 = scmp.ne.s32.totalorder %s967_s5, %s765_s20  ;;  %p769_p11 = scmp.lt.u32.totalorder %s765_s20, %s967_s5 }
  0x38   :  { %p771_p12 = pnand %p769_p11, %p766_p10 }
  0x3a   :  { %774 = shalt.err (!%p771_p12)
}
  0x3b   :  { %s775_s1 = scalar_lea.vmem %s901_s30, 2048  ;;  %p780_p0 = scmp.lt.s32.totalorder %s901_s30, %s901_s30 }
  0x3c   :  { %p776_p13 = scmp.ne.s32.totalorder %s901_s30, %s775_s1  ;;  %p781_p1 = scmp.lt.s32.totalorder %s775_s1, %s775_s1 }
  0x3e   :  { %p782_p2 = por %p781_p1, %p780_p0 }
  0x40   :  { %p783_p3 = pnand %p782_p2, %p776_p13 }
  0x42   :  { %786 = shalt.err (!%p783_p3)
}
  0x43   :  { %67 = dma.hbm_to_vmem [thread:$0]  %s967_s5, 2048, %s901_s30, [#allocation9], %s819_s13, %s819_s13, %s820_s14  }
  0x44   :  { %809 = dma.done.wait [#allocation3], 256  }
  0x45   :  { %810 = vsyncadd [#allocation3], 4294967040 }
  0x46   :  { %811 = dma.done.wait [#allocation6], 4096  }
  0x47   :  { %812 = vsyncadd [#allocation6], 4294963200 }
  0x48   :  { %813 = dma.done.wait [#allocation9], 2048  }
  0x49   :  { %814 = vsyncadd [#allocation9], 4294965248  ;;  %v84_v0 = vld [vmem:[#allocation5] sm:$0xff]  ;;  %v85_v1 = vld [vmem:[#allocation5 + $0x8] sm:$0xff] }
  0x4a   :  { %v86_v2 = vld [vmem:[#allocation5 + $0x10] sm:$0xff]  ;;  %v588_v3 = vpack.c.bf16 %v85_v1, %v84_v0  ;;  %v87_v4 = vld [vmem:[#allocation5 + $0x18] sm:$0xff]  ;;  %v88_v6 = vld [vmem:[#allocation5 + $0x20] sm:$0xff] }
  0x4b   :  { %v592_v5 = vpack.c.bf16 %v87_v4, %v86_v2  ;;  %v89_v7 = vld [vmem:[#allocation5 + $0x28] sm:$0xff]  ;;  %v90_v9 = vld [vmem:[#allocation5 + $0x30] sm:$0xff]  ;;  %v91_v10 = vld [vmem:[#allocation5 + $0x38] sm:$0xff] }
  0x4c   :  { %589 = vmatprep.subr.bf16.mxu0 %v588_v3  ;;  %v596_v8 = vpack.c.bf16 %v89_v7, %v88_v6  ;;  %v82_v11 = vld [vmem:[#allocation2] sm:$0xff]  ;;  %v184_v12 = vld [vmem:[#allocation7] sm:$0xff]  ;;  %v185_v13 = vld [vmem:[#allocation7 + $0x8] sm:$0xff]  ;;  %v600_v20 = vpack.c.bf16 %v91_v10, %v90_v9 }
  0x4d   :  { %591 = vmatpush3.bf16.msra.mxu0 %v588_v3  ;;  %515 = vmatprep.mubr.f32.mxu0 %v82_v11  ;;  %v186_v14 = vld [vmem:[#allocation7 + $0x10] sm:$0xff]  ;;  %v620_v15 = vpack.c.bf16 %v185_v13, %v184_v12  ;;  %v187_v16 = vld [vmem:[#allocation7 + $0x18] sm:$0xff]  ;;  %v188_v18 = vld [vmem:[#allocation7 + $0x20] sm:$0xff] }
  0x4e   :  { %593 = vmatprep.subr.bf16.mxu0 %v592_v5  ;;  %v624_v17 = vpack.c.bf16 %v187_v16, %v186_v14  ;;  %v189_v19 = vld [vmem:[#allocation7 + $0x28] sm:$0xff]  ;;  %v92_v21 = vld [vmem:[#allocation5 + $0x40] sm:$0xff]  ;;  %v190_v24 = vld [vmem:[#allocation7 + $0x30] sm:$0xff] }
  0x4f   :  { %621 = vmatprep.subr.bf16.mxu1 %v620_v15  ;;  %v93_v22 = vld [vmem:[#allocation5 + $0x48] sm:$0xff]  ;;  %v628_v23 = vpack.c.bf16 %v189_v19, %v188_v18  ;;  %v191_v25 = vld [vmem:[#allocation7 + $0x38] sm:$0xff]  ;;  %v94_v27 = vld [vmem:[#allocation5 + $0x50] sm:$0xff] }
  0x50   :  { %623 = vmatpush3.bf16.msra.mxu1 %v620_v15  ;;  %v604_v26 = vpack.c.bf16 %v93_v22, %v92_v21  ;;  %v95_v28 = vld [vmem:[#allocation5 + $0x58] sm:$0xff]  ;;  %v632_v29 = vpack.c.bf16 %v191_v25, %v190_v24  ;;  %v192_v30 = vld [vmem:[#allocation7 + $0x40] sm:$0xff]  ;;  %v193_v31 = vld [vmem:[#allocation7 + $0x48] sm:$0xff]  ;;  %v382_v24 = vlaneseq }
  0x51   :  { %595 = vmatpush3.bf16.msra.mxu0 %v592_v5  ;;  %625 = vmatprep.subr.bf16.mxu1 %v624_v17  ;;  %v608_v32 = vpack.c.bf16 %v95_v28, %v94_v27  ;;  %v96_v33 = vld [vmem:[#allocation5 + $0x60] sm:$0xff]  ;;  %v97_v34 = vld [vmem:[#allocation5 + $0x68] sm:$0xff]  ;;  %v636_v35 = vpack.c.bf16 %v193_v31, %v192_v30  ;;  %v194_v36 = vld [vmem:[#allocation7 + $0x50] sm:$0xff] }
  0x52   :  { %597 = vmatprep.subr.bf16.mxu0 %v596_v8  ;;  %v195_v37 = vld [vmem:[#allocation7 + $0x58] sm:$0xff]  ;;  %v612_v38 = vpack.c.bf16 %v97_v34, %v96_v33  ;;  %v98_v39 = vld [vmem:[#allocation5 + $0x70] sm:$0xff]  ;;  %v196_v42 = vld [vmem:[#allocation7 + $0x60] sm:$0xff]  ;;  %v383_v25 = vand.u32 127, %v382_v24 }
  0x53   :  { %v99_v40 = vld [vmem:[#allocation5 + $0x78] sm:$0xff]  ;;  %v640_v41 = vpack.c.bf16 %v195_v37, %v194_v36  ;;  %v197_v43 = vld [vmem:[#allocation7 + $0x68] sm:$0xff]  ;;  %v198_v47 = vld [vmem:[#allocation7 + $0x70] sm:$0xff] }
  0x54   :  { %627 = vmatpush3.bf16.msra.mxu1 %v624_v17  ;;  %v616_v44 = vpack.c.bf16 %v99_v40, %v98_v39  ;;  %v644_v45 = vpack.c.bf16 %v197_v43, %v196_v42  ;;  %v83_v46 = vld [vmem:[#allocation2 + $0x8] sm:$0xff]  ;;  %v284_v50 = vld [vmem:[#allocation8] sm:$0xff]  ;;  %v285_v51 = vld [vmem:[#allocation8 + $0x8] sm:$0xff]  ;;  %vm384_vm0 = vcmp.lt.s32.totalorder %v383_v25, 16 }
  0x55   :  { %599 = vmatpush3.bf16.msra.mxu0 %v596_v8  ;;  %629 = vmatprep.subr.bf16.mxu1 %v628_v23  ;;  %v199_v48 = vld [vmem:[#allocation7 + $0x78] sm:$0xff]  ;;  %v286_v52 = vld [vmem:[#allocation8 + $0x10] sm:$0xff]  ;;  %v652_v53 = vpack.c.bf16 %v285_v51, %v284_v50  ;;  %v288_v56 = vld [vmem:[#allocation8 + $0x20] sm:$0xff] }
  0x56   :  { %601 = vmatprep.subr.bf16.mxu0 %v600_v20  ;;  %v648_v49 = vpack.c.bf16 %v199_v48, %v198_v47  ;;  %v287_v54 = vld [vmem:[#allocation8 + $0x18] sm:$0xff]  ;;  %v289_v57 = vld [vmem:[#allocation8 + $0x28] sm:$0xff]  ;;  %v290_v59 = vld [vmem:[#allocation8 + $0x30] sm:$0xff] }
  0x57   :  { %v656_v55 = vpack.c.bf16 %v287_v54, %v286_v52  ;;  %v660_v58 = vpack.c.bf16 %v289_v57, %v288_v56  ;;  %v291_v60 = vld [vmem:[#allocation8 + $0x38] sm:$0xff]  ;;  %v292_v62 = vld [vmem:[#allocation8 + $0x40] sm:$0xff]  ;;  %v293_v63 = vld [vmem:[#allocation8 + $0x48] sm:$0xff] }
  0x58   :  { %631 = vmatpush3.bf16.msra.mxu1 %v628_v23  ;;  %v664_v61 = vpack.c.bf16 %v291_v60, %v290_v59  ;;  %v668_v0 = vpack.c.bf16 %v293_v63, %v292_v62  ;;  %v294_v1 = vld [vmem:[#allocation8 + $0x50] sm:$0xff]  ;;  %v295_v2 = vld [vmem:[#allocation8 + $0x58] sm:$0xff]  ;;  %v296_v4 = vld [vmem:[#allocation8 + $0x60] sm:$0xff] }
  0x59   :  { %603 = vmatpush3.bf16.msra.mxu0 %v600_v20  ;;  %633 = vmatprep.subr.bf16.mxu1 %v632_v29  ;;  %v672_v3 = vpack.c.bf16 %v295_v2, %v294_v1  ;;  %v297_v5 = vld [vmem:[#allocation8 + $0x68] sm:$0xff]  ;;  %v426_v7 = vld [vmem:[%s964_s2] ss:$0 sm:$0xff]  ;;  %v299_v15 = vld [vmem:[#allocation8 + $0x78] sm:$0xff] }
  0x5a   :  { %605 = vmatprep.subr.bf16.mxu0 %v604_v26  ;;  %v676_v6 = vpack.c.bf16 %v297_v5, %v296_v4  ;;  %v298_v14 = vld [vmem:[#allocation8 + $0x70] sm:$0xff] }
  0x5b   :  { %v680_v16 = vpack.c.bf16 %v299_v15, %v298_v14  ;;  %v427_v17 = vld [vmem:[%s966_s4] ss:$0 sm:$0xff]  ;;  %s823_s4 = smov [#allocation10]  }
  0x5c   :  { %635 = vmatpush3.bf16.msra.mxu1 %v632_v29 }
  0x5d   :  { %607 = vmatpush3.bf16.msra.mxu0 %v604_v26  ;;  %637 = vmatprep.subr.bf16.mxu1 %v636_v35  ;;  %v428_v26 = vld [vmem:[%s968_s6] ss:$0 sm:$0xff]  ;;  %s412_s6 = sshll.u32 %s823_s4, 4  ;;  %s413_s6 = int_to_ptr.vmem [resolvable:$true] %s412_s6 }
  0x5e   :  { %609 = vmatprep.subr.bf16.mxu0 %v608_v32  ;;  %s787_s8 = scalar_lea.vmem %s413_s6, 256  ;;  %p792_p5 = scmp.lt.s32.totalorder %s413_s6, %s413_s6 }
  0x5f   :  { %p788_p4 = scmp.ne.s32.totalorder %s413_s6, %s787_s8  ;;  %p793_p6 = scmp.lt.s32.totalorder %s787_s8, %s787_s8 }
  0x60   :  { %639 = vmatpush3.bf16.msra.mxu1 %v636_v35 }
  0x61   :  { %611 = vmatpush3.bf16.msra.mxu0 %v608_v32  ;;  %641 = vmatprep.subr.bf16.mxu1 %v640_v41  ;;  %p794_p7 = por %p793_p6, %p792_p5 }
  0x62   :  { %613 = vmatprep.subr.bf16.mxu0 %v612_v38 }
  0x63   :  { %p795_p8 = pnand %p794_p7, %p788_p4 }
  0x64   :  { %643 = vmatpush3.bf16.msra.mxu1 %v640_v41 }
  0x65   :  { %615 = vmatpush3.bf16.msra.mxu0 %v612_v38  ;;  %645 = vmatprep.subr.bf16.mxu1 %v644_v45 }
  0x66   :  { %617 = vmatprep.subr.bf16.mxu0 %v616_v44 }
  0x68   :  { %647 = vmatpush3.bf16.msra.mxu1 %v644_v45 }
  0x69   :  { %619 = vmatpush3.bf16.msra.mxu0 %v616_v44  ;;  %649 = vmatprep.subr.bf16.mxu1 %v648_v49 }
  0x6a   :  { %653 = vmatprep.subr.bf16.mxu0 %v652_v53 }
  0x6c   :  { %516 = vmatmul.mubr.f32.vlgmr.msra.gmra.mrb[0].mxu0 %v83_v46  ;;  %651 = vmatpush3.bf16.msra.mxu1 %v648_v49 }
  0x6d   :  { %655 = vmatpush3.bf16.msra.mxu0 %v652_v53 }
  0x6e   :  { %657 = vmatprep.subr.bf16.mxu0 %v656_v55 }
  0x71   :  { %659 = vmatpush3.bf16.msra.mxu0 %v656_v55 }
  0x72   :  { %661 = vmatprep.subr.bf16.mxu0 %v660_v58 }
  0x75   :  { %663 = vmatpush3.bf16.msra.mxu0 %v660_v58 }
  0x76   :  { %665 = vmatprep.subr.bf16.mxu0 %v664_v61 }
  0x79   :  { %667 = vmatpush3.bf16.msra.mxu0 %v664_v61 }
  0x7a   :  { %669 = vmatprep.subr.bf16.mxu0 %v668_v0 }
  0x7d   :  { %671 = vmatpush3.bf16.msra.mxu0 %v668_v0 }
  0x7e   :  { %673 = vmatprep.subr.bf16.mxu0 %v672_v3 }
  0x81   :  { %675 = vmatpush3.bf16.msra.mxu0 %v672_v3 }
  0x82   :  { %677 = vmatprep.subr.bf16.mxu0 %v676_v6 }
  0x85   :  { %679 = vmatpush3.bf16.msra.mxu0 %v676_v6 }
  0x86   :  { %681 = vmatprep.subr.bf16.mxu0 %v680_v16 }
  0x89   :  { %683 = vmatpush3.bf16.msra.mxu0 %v680_v16 }
 0x13f   :  { %v517_v8 = vpop.f32.mrb[0].mxu0 }
 0x140   :  { %v179_v9 = vadd.f32 %v517_v8, %v426_v7  ;;  %v173_v10 = vpop.f32.mrb[1].mxu0 }
 0x141   :  { %v174_v11 = vadd.f32 %v426_v7, %v173_v10 }
 0x142   :  { %v183_v13 = vmax.f32 %v179_v9, 0.0 }
 0x143   :  { %v182_v12 = vmax.f32 %v174_v11, 0.0 }
 0x145   :  { %550 = vmatprep.mubr.f32.mxu1 %v182_v12 }
 0x146   :  { %551 = vmatmul.mubr.f32.vlgmr.msra.gmra.mrb[0].mxu1 %v183_v13 }
 0x219   :  { %v552_v18 = vpop.f32.mrb[0].mxu1 }
 0x21a   :  { %v279_v19 = vadd.f32 %v552_v18, %v427_v17  ;;  %v273_v20 = vpop.f32.mrb[1].mxu1 }
 0x21b   :  { %v274_v21 = vadd.f32 %v427_v17, %v273_v20 }
 0x21c   :  { %v283_v23 = vmax.f32 %v279_v19, 0.0 }
 0x21d   :  { %v282_v22 = vmax.f32 %v274_v21, 0.0 }
 0x21f   :  { %585 = vmatprep.mubr.f32.mxu0 %v282_v22 }
 0x220   :  { %586 = vmatmul.mubr.f32.vlgmr.msra.gmra.mrb[2].mxu0 %v283_v23 }
 0x2f3   :  { %v587_v27 = vpop.f32.mrb[2].mxu0 }
 0x2f4   :  { %v373_v28 = vpop.f32.mrb[3].mxu0  ;;  %v379_v30 = vadd.f32 %v587_v27, %v428_v26 }
 0x2f5   :  { %v374_v29 = vadd.f32 %v428_v26, %v373_v28 }
 0x2f6   :  { %v386_v32 = vsel %vm384_vm0, %v379_v30, -1e+30 }
 0x2f7   :  { %v385_v31 = vsel %vm384_vm0, %v374_v29, -1e+30 }
 0x2f8   :  { %387 = vmax.xlane.f32.xlu0 %v385_v31 }
 0x2fc   :  { %389 = vmax.xlane.f32.xlu0 %v386_v32 }
 0x385   :  { %v388_v33 = vpop.xlane.xlu0 %387 }
 0x386   :  { %v391_v34 = vsub.f32 %v385_v31, %v388_v33 }
 0x388   :  { %v393_v35 = vmul.f32 1.442695, %v391_v34 }
 0x389   :  { %v390_v36 = vpop.xlane.xlu0 %389 }
 0x38a   :  { %691 = vpow2.f32 %v393_v35  ;;  %v392_v37 = vsub.f32 %v386_v32, %v390_v36 }
 0x38c   :  { %v395_v38 = vmul.f32 1.442695, %v392_v37 }
 0x38e   :  { %693 = vpow2.f32 %v395_v38 }
 0x394   :  { %v692_v39 = vpop.eup %691 }
 0x395   :  { %397 = vadd.xlane.f32.xlu1 %v692_v39 }
 0x398   :  { %v694_v40 = vpop.eup %693 }
 0x399   :  { %399 = vadd.xlane.f32.xlu1 %v694_v40 }
 0x422   :  { %v398_v41 = vpop.xlane.xlu1 %397 }
 0x423   :  { %695 = vrcp.f32 %v398_v41 }
 0x426   :  { %v400_v42 = vpop.xlane.xlu1 %399 }
 0x427   :  { %697 = vrcp.f32 %v400_v42 }
 0x42d   :  { %v696_v43 = vpop.eup %695 }
 0x42e   :  { %v402_v44 = vmul.f32 %v696_v43, %v692_v39 }
 0x430   :  { %405 = vst [vmem:[#allocation10] sm:$0xff] %v402_v44 }
 0x431   :  { %v698_v45 = vpop.eup %697 }
 0x432   :  { %v404_v46 = vmul.f32 %v698_v45, %v694_v40 }
 0x434   :  { %406 = vst [vmem:[#allocation10 + $0x8] sm:$0xff] %v404_v46 }
 0x435   :  { %798 = shalt.err (!%p795_p8)
}
 0x436   :  { %s799_s11 = scalar_lea.hbm %s969_s7, 256 }
 0x437   :  { %p800_p9 = scmp.ne.s32.totalorder %s969_s7, %s799_s11  ;;  %p803_p10 = scmp.lt.u32.totalorder %s799_s11, %s969_s7 }
 0x439   :  { %p805_p11 = pnand %p803_p10, %p800_p9 }
 0x43b   :  { %808 = shalt.err (!%p805_p11)
}
 0x43c   :  { %418 = dma.vmem_to_hbm [thread:$0]  %s413_s6, 256, %s969_s7, [#allocation4], %s819_s13, %s819_s13, %s820_s14  }
 0x43d   :  { %815 = dma.done.wait [#allocation4], 256  }
 0x43e   :  { %816 = vsyncadd [#allocation4], 4294967040 }
 0x43f   :  { %422 = vsyncpa [#allocation3], 1 }
 0x440   :  { %423 = vsyncpa [#allocation6], 1 }
 0x441   :  { %424 = vsyncpa [#allocation9], 1 }
 0x442   :  { %425 = vsyncpa [#allocation4], 1 }

// kernel: tpu_custom_call.1
= control target key start
LH: loop header
LB: loop body
LE: loop exit
PB: predicated region body
PF: predicated region fallthrough
CT: control target
= control target key end

     0   :  { %12 = vsyncpa [#allocation3], 0  ;;  %s962_s0 = inlined_call_operand.hbm [shape: f32[16,128], index: 0, kind: input, shape index: {}]   ;;  %s963_s1 = inlined_call_operand.hbm [shape: f32[128,128], index: 1, kind: input, shape index: {}]   ;;  %s964_s2 = inlined_call_operand.vmem [shape: f32[1,128], index: 2, kind: input, shape index: {}]   ;;  %s965_s3 = inlined_call_operand.hbm [shape: f32[128,128], index: 3, kind: input, shape index: {}]   ;;  %s966_s4 = inlined_call_operand.vmem [shape: f32[1,128], index: 4, kind: input, shape index: {}]   ;;  %s967_s5 = inlined_call_operand.hbm [shape: f32[128,128], index: 5, kind: input, shape index: {}]   ;;  %s968_s6 = inlined_call_operand.vmem [shape: f32[1,128], index: 6, kind: input, shape index: {}]   ;;  %s969_s7 = inlined_call_operand.hbm [shape: f32[16,128], index: 7, kind: output, shape index: {}]  }
   0x1   :  { %13 = vsyncpa [#allocation6], 0 }
   0x2   :  { %14 = vsyncpa [#allocation9], 0 }
   0x3   :  { %15 = vsyncpa [#allocation4], 0  ;;  %s817_s24 = smov [#allocation5]   ;;  %s818_s26 = smov [#allocation2]  }
   0x4   :  { %s33_s25 = sshll.u32 %s817_s24, 4  ;;  %s21_s27 = sshll.u32 %s818_s26, 4  ;;  %s34_s25 = int_to_ptr.vmem [resolvable:$true] %s33_s25  ;;  %s864_s27 = int_to_ptr.vmem [resolvable:$true] %s21_s27 }
   0x5   :  { %s699_s30 = scalar_lea.hbm %s963_s1, 2048 }
   0x6   :  { %p700_p0 = scmp.ne.s32.totalorder %s963_s1, %s699_s30  ;;  %p703_p1 = scmp.lt.u32.totalorder %s699_s30, %s963_s1 }
   0x8   :  { %p705_p2 = pnand %p703_p1, %p700_p0 }
   0xa   :  { %708 = shalt.err (!%p705_p2)
}
   0xb   :  { %s709_s12 = scalar_lea.vmem %s34_s25, 2048  ;;  %p714_p4 = scmp.lt.s32.totalorder %s34_s25, %s34_s25 }
   0xc   :  { %p710_p3 = scmp.ne.s32.totalorder %s34_s25, %s709_s12  ;;  %p715_p5 = scmp.lt.s32.totalorder %s709_s12, %s709_s12 }
   0xe   :  { %p716_p6 = por %p715_p5, %p714_p4 }
  0x10   :  { %p717_p7 = pnand %p716_p6, %p710_p3 }
  0x12   :  { %720 = shalt.err (!%p717_p7)
}
  0x13   :  { %s819_s13 = smov 128   ;;  %s820_s14 = smov 8  }
  0x14   :  { %39 = dma.hbm_to_vmem [thread:$0]  %s963_s1, 2048, %s34_s25, [#allocation6], %s819_s13, %s819_s13, %s820_s14  }
  0x15   :  { %s721_s19 = scalar_lea.hbm %s962_s0, 256 }
  0x16   :  { %p722_p8 = scmp.ne.s32.totalorder %s962_s0, %s721_s19  ;;  %p725_p9 = scmp.lt.u32.totalorder %s721_s19, %s962_s0 }
  0x18   :  { %p727_p10 = pnand %p725_p9, %p722_p8 }
  0x1a   :  { %730 = shalt.err (!%p727_p10)
}
  0x1b   :  { %s731_s24 = scalar_lea.vmem %s864_s27, 256  ;;  %p736_p12 = scmp.lt.s32.totalorder %s864_s27, %s864_s27 }
  0x1c   :  { %p732_p11 = scmp.ne.s32.totalorder %s864_s27, %s731_s24  ;;  %p737_p13 = scmp.lt.s32.totalorder %s731_s24, %s731_s24 }
  0x1e   :  { %p738_p0 = por %p737_p13, %p736_p12 }
  0x20   :  { %p739_p1 = pnand %p738_p0, %p732_p11 }
  0x22   :  { %742 = shalt.err (!%p739_p1)
}
  0x23   :  { %27 = dma.hbm_to_vmem [thread:$0]  %s962_s0, 256, %s864_s27, [#allocation3], %s819_s13, %s819_s13, %s820_s14  }
  0x24   :  { %s821_s26 = smov [#allocation7]   ;;  %s822_s29 = smov [#allocation8]  }
  0x25   :  { %s47_s28 = sshll.u32 %s821_s26, 4  ;;  %s61_s30 = sshll.u32 %s822_s29, 4  ;;  %s48_s28 = int_to_ptr.vmem [resolvable:$true] %s47_s28  ;;  %s901_s30 = int_to_ptr.vmem [resolvable:$true] %s61_s30 }
  0x26   :  { %s743_s10 = scalar_lea.hbm %s965_s3, 2048 }
  0x27   :  { %p744_p2 = scmp.ne.s32.totalorder %s965_s3, %s743_s10  ;;  %p747_p3 = scmp.lt.u32.totalorder %s743_s10, %s965_s3 }
  0x29   :  { %p749_p4 = pnand %p747_p3, %p744_p2 }
  0x2b   :  { %752 = shalt.err (!%p749_p4)
}
  0x2c   :  { %s753_s0 = scalar_lea.vmem %s48_s28, 2048  ;;  %p758_p6 = scmp.lt.s32.totalorder %s48_s28, %s48_s28 }
  0x2d   :  { %p754_p5 = scmp.ne.s32.totalorder %s48_s28, %s753_s0  ;;  %p759_p7 = scmp.lt.s32.totalorder %s753_s0, %s753_s0 }
  0x2f   :  { %p760_p8 = por %p759_p7, %p758_p6 }
  0x31   :  { %p761_p9 = pnand %p760_p8, %p754_p5 }
  0x33   :  { %764 = shalt.err (!%p761_p9)
}
  0x34   :  { %53 = dma.hbm_to_vmem [thread:$0]  %s965_s3, 2048, %s48_s28, [#allocation6], %s819_s13, %s819_s13, %s820_s14  }
  0x35   :  { %s765_s20 = scalar_lea.hbm %s967_s5, 2048 }
  0x36   :  { %p766_p10 = scmp.ne.s32.totalorder %s967_s5, %s765_s20  ;;  %p769_p11 = scmp.lt.u32.totalorder %s765_s20, %s967_s5 }
  0x38   :  { %p771_p12 = pnand %p769_p11, %p766_p10 }
  0x3a   :  { %774 = shalt.err (!%p771_p12)
}
  0x3b   :  { %s775_s1 = scalar_lea.vmem %s901_s30, 2048  ;;  %p780_p0 = scmp.lt.s32.totalorder %s901_s30, %s901_s30 }
  0x3c   :  { %p776_p13 = scmp.ne.s32.totalorder %s901_s30, %s775_s1  ;;  %p781_p1 = scmp.lt.s32.totalorder %s775_s1, %s775_s1 }
  0x3e   :  { %p782_p2 = por %p781_p1, %p780_p0 }
  0x40   :  { %p783_p3 = pnand %p782_p2, %p776_p13 }
  0x42   :  { %786 = shalt.err (!%p783_p3)
}
  0x43   :  { %67 = dma.hbm_to_vmem [thread:$0]  %s967_s5, 2048, %s901_s30, [#allocation9], %s819_s13, %s819_s13, %s820_s14  }
  0x44   :  { %809 = dma.done.wait [#allocation3], 256  }
  0x45   :  { %810 = vsyncadd [#allocation3], 4294967040 }
  0x46   :  { %811 = dma.done.wait [#allocation6], 4096  }
  0x47   :  { %812 = vsyncadd [#allocation6], 4294963200 }
  0x48   :  { %813 = dma.done.wait [#allocation9], 2048  }
  0x49   :  { %814 = vsyncadd [#allocation9], 4294965248  ;;  %v84_v0 = vld [vmem:[#allocation5] sm:$0xff]  ;;  %v85_v1 = vld [vmem:[#allocation5 + $0x8] sm:$0xff] }
  0x4a   :  { %v86_v2 = vld [vmem:[#allocation5 + $0x10] sm:$0xff]  ;;  %v588_v3 = vpack.c.bf16 %v85_v1, %v84_v0  ;;  %v87_v4 = vld [vmem:[#allocation5 + $0x18] sm:$0xff]  ;;  %v88_v6 = vld [vmem:[#allocation5 + $0x20] sm:$0xff] }
  0x4b   :  { %v592_v5 = vpack.c.bf16 %v87_v4, %v86_v2  ;;  %v89_v7 = vld [vmem:[#allocation5 + $0x28] sm:$0xff]  ;;  %v90_v9 = vld [vmem:[#allocation5 + $0x30] sm:$0xff]  ;;  %v91_v10 = vld [vmem:[#allocation5 + $0x38] sm:$0xff] }
  0x4c   :  { %589 = vmatprep.subr.bf16.mxu0 %v588_v3  ;;  %v596_v8 = vpack.c.bf16 %v89_v7, %v88_v6  ;;  %v82_v11 = vld [vmem:[#allocation2] sm:$0xff]  ;;  %v184_v12 = vld [vmem:[#allocation7] sm:$0xff]  ;;  %v185_v13 = vld [vmem:[#allocation7 + $0x8] sm:$0xff]  ;;  %v600_v20 = vpack.c.bf16 %v91_v10, %v90_v9 }
  0x4d   :  { %591 = vmatpush3.bf16.msra.mxu0 %v588_v3  ;;  %515 = vmatprep.mubr.f32.mxu0 %v82_v11  ;;  %v186_v14 = vld [vmem:[#allocation7 + $0x10] sm:$0xff]  ;;  %v620_v15 = vpack.c.bf16 %v185_v13, %v184_v12  ;;  %v187_v16 = vld [vmem:[#allocation7 + $0x18] sm:$0xff]  ;;  %v188_v18 = vld [vmem:[#allocation7 + $0x20] sm:$0xff] }
  0x4e   :  { %593 = vmatprep.subr.bf16.mxu0 %v592_v5  ;;  %v624_v17 = vpack.c.bf16 %v187_v16, %v186_v14  ;;  %v189_v19 = vld [vmem:[#allocation7 + $0x28] sm:$0xff]  ;;  %v92_v21 = vld [vmem:[#allocation5 + $0x40] sm:$0xff]  ;;  %v190_v24 = vld [vmem:[#allocation7 + $0x30] sm:$0xff] }
  0x4f   :  { %621 = vmatprep.subr.bf16.mxu1 %v620_v15  ;;  %v93_v22 = vld [vmem:[#allocation5 + $0x48] sm:$0xff]  ;;  %v628_v23 = vpack.c.bf16 %v189_v19, %v188_v18  ;;  %v191_v25 = vld [vmem:[#allocation7 + $0x38] sm:$0xff]  ;;  %v94_v27 = vld [vmem:[#allocation5 + $0x50] sm:$0xff] }
  0x50   :  { %623 = vmatpush3.bf16.msra.mxu1 %v620_v15  ;;  %v604_v26 = vpack.c.bf16 %v93_v22, %v92_v21  ;;  %v95_v28 = vld [vmem:[#allocation5 + $0x58] sm:$0xff]  ;;  %v632_v29 = vpack.c.bf16 %v191_v25, %v190_v24  ;;  %v192_v30 = vld [vmem:[#allocation7 + $0x40] sm:$0xff]  ;;  %v193_v31 = vld [vmem:[#allocation7 + $0x48] sm:$0xff]  ;;  %v382_v24 = vlaneseq }
  0x51   :  { %595 = vmatpush3.bf16.msra.mxu0 %v592_v5  ;;  %625 = vmatprep.subr.bf16.mxu1 %v624_v17  ;;  %v608_v32 = vpack.c.bf16 %v95_v28, %v94_v27  ;;  %v96_v33 = vld [vmem:[#allocation5 + $0x60] sm:$0xff]  ;;  %v97_v34 = vld [vmem:[#allocation5 + $0x68] sm:$0xff]  ;;  %v636_v35 = vpack.c.bf16 %v193_v31, %v192_v30  ;;  %v194_v36 = vld [vmem:[#allocation7 + $0x50] sm:$0xff] }
  0x52   :  { %597 = vmatprep.subr.bf16.mxu0 %v596_v8  ;;  %v195_v37 = vld [vmem:[#allocation7 + $0x58] sm:$0xff]  ;;  %v612_v38 = vpack.c.bf16 %v97_v34, %v96_v33  ;;  %v98_v39 = vld [vmem:[#allocation5 + $0x70] sm:$0xff]  ;;  %v196_v42 = vld [vmem:[#allocation7 + $0x60] sm:$0xff]  ;;  %v383_v25 = vand.u32 127, %v382_v24 }
  0x53   :  { %v99_v40 = vld [vmem:[#allocation5 + $0x78] sm:$0xff]  ;;  %v640_v41 = vpack.c.bf16 %v195_v37, %v194_v36  ;;  %v197_v43 = vld [vmem:[#allocation7 + $0x68] sm:$0xff]  ;;  %v198_v47 = vld [vmem:[#allocation7 + $0x70] sm:$0xff] }
  0x54   :  { %627 = vmatpush3.bf16.msra.mxu1 %v624_v17  ;;  %v616_v44 = vpack.c.bf16 %v99_v40, %v98_v39  ;;  %v644_v45 = vpack.c.bf16 %v197_v43, %v196_v42  ;;  %v83_v46 = vld [vmem:[#allocation2 + $0x8] sm:$0xff]  ;;  %v284_v50 = vld [vmem:[#allocation8] sm:$0xff]  ;;  %v285_v51 = vld [vmem:[#allocation8 + $0x8] sm:$0xff]  ;;  %vm384_vm0 = vcmp.lt.s32.totalorder %v383_v25, 16 }
  0x55   :  { %599 = vmatpush3.bf16.msra.mxu0 %v596_v8  ;;  %629 = vmatprep.subr.bf16.mxu1 %v628_v23  ;;  %v199_v48 = vld [vmem:[#allocation7 + $0x78] sm:$0xff]  ;;  %v286_v52 = vld [vmem:[#allocation8 + $0x10] sm:$0xff]  ;;  %v652_v53 = vpack.c.bf16 %v285_v51, %v284_v50  ;;  %v288_v56 = vld [vmem:[#allocation8 + $0x20] sm:$0xff] }
  0x56   :  { %601 = vmatprep.subr.bf16.mxu0 %v600_v20  ;;  %v648_v49 = vpack.c.bf16 %v199_v48, %v198_v47  ;;  %v287_v54 = vld [vmem:[#allocation8 + $0x18] sm:$0xff]  ;;  %v289_v57 = vld [vmem:[#allocation8 + $0x28] sm:$0xff]  ;;  %v290_v59 = vld [vmem:[#allocation8 + $0x30] sm:$0xff] }
  0x57   :  { %v656_v55 = vpack.c.bf16 %v287_v54, %v286_v52  ;;  %v660_v58 = vpack.c.bf16 %v289_v57, %v288_v56  ;;  %v291_v60 = vld [vmem:[#allocation8 + $0x38] sm:$0xff]  ;;  %v292_v62 = vld [vmem:[#allocation8 + $0x40] sm:$0xff]  ;;  %v293_v63 = vld [vmem:[#allocation8 + $0x48] sm:$0xff] }
  0x58   :  { %631 = vmatpush3.bf16.msra.mxu1 %v628_v23  ;;  %v664_v61 = vpack.c.bf16 %v291_v60, %v290_v59  ;;  %v668_v0 = vpack.c.bf16 %v293_v63, %v292_v62  ;;  %v294_v1 = vld [vmem:[#allocation8 + $0x50] sm:$0xff]  ;;  %v295_v2 = vld [vmem:[#allocation8 + $0x58] sm:$0xff]  ;;  %v296_v4 = vld [vmem:[#allocation8 + $0x60] sm:$0xff] }
  0x59   :  { %603 = vmatpush3.bf16.msra.mxu0 %v600_v20  ;;  %633 = vmatprep.subr.bf16.mxu1 %v632_v29  ;;  %v672_v3 = vpack.c.bf16 %v295_v2, %v294_v1  ;;  %v297_v5 = vld [vmem:[#allocation8 + $0x68] sm:$0xff]  ;;  %v426_v7 = vld [vmem:[%s964_s2] ss:$0 sm:$0xff]  ;;  %v299_v15 = vld [vmem:[#allocation8 + $0x78] sm:$0xff] }
  0x5a   :  { %605 = vmatprep.subr.bf16.mxu0 %v604_v26  ;;  %v676_v6 = vpack.c.bf16 %v297_v5, %v296_v4  ;;  %v298_v14 = vld [vmem:[#allocation8 + $0x70] sm:$0xff] }
  0x5b   :  { %v680_v16 = vpack.c.bf16 %v299_v15, %v298_v14  ;;  %v427_v17 = vld [vmem:[%s966_s4] ss:$0 sm:$0xff]  ;;  %s823_s4 = smov [#allocation10]  }
  0x5c   :  { %635 = vmatpush3.bf16.msra.mxu1 %v632_v29 }
  0x5d   :  { %607 = vmatpush3.bf16.msra.mxu0 %v604_v26  ;;  %637 = vmatprep.subr.bf16.mxu1 %v636_v35  ;;  %v428_v26 = vld [vmem:[%s968_s6] ss:$0 sm:$0xff]  ;;  %s412_s6 = sshll.u32 %s823_s4, 4  ;;  %s413_s6 = int_to_ptr.vmem [resolvable:$true] %s412_s6 }
  0x5e   :  { %609 = vmatprep.subr.bf16.mxu0 %v608_v32  ;;  %s787_s8 = scalar_lea.vmem %s413_s6, 256  ;;  %p792_p5 = scmp.lt.s32.totalorder %s413_s6, %s413_s6 }
  0x5f   :  { %p788_p4 = scmp.ne.s32.totalorder %s413_s6, %s787_s8  ;;  %p793_p6 = scmp.lt.s32.totalorder %s787_s8, %s787_s8 }
  0x60   :  { %639 = vmatpush3.bf16.msra.mxu1 %v636_v35 }
  0x61   :  { %611 = vmatpush3.bf16.msra.mxu0 %v608_v32  ;;  %641 = vmatprep.subr.bf16.mxu1 %v640_v41  ;;  %p794_p7 = por %p793_p6, %p792_p5 }
  0x62   :  { %613 = vmatprep.subr.bf16.mxu0 %v612_v38 }
  0x63   :  { %p795_p8 = pnand %p794_p7, %p788_p4 }
  0x64   :  { %643 = vmatpush3.bf16.msra.mxu1 %v640_v41 }
  0x65   :  { %615 = vmatpush3.bf16.msra.mxu0 %v612_v38  ;;  %645 = vmatprep.subr.bf16.mxu1 %v644_v45 }
  0x66   :  { %617 = vmatprep.subr.bf16.mxu0 %v616_v44 }
  0x68   :  { %647 = vmatpush3.bf16.msra.mxu1 %v644_v45 }
  0x69   :  { %619 = vmatpush3.bf16.msra.mxu0 %v616_v44  ;;  %649 = vmatprep.subr.bf16.mxu1 %v648_v49 }
  0x6a   :  { %653 = vmatprep.subr.bf16.mxu0 %v652_v53 }
  0x6c   :  { %516 = vmatmul.mubr.f32.vlgmr.msra.gmra.mrb[0].mxu0 %v83_v46  ;;  %651 = vmatpush3.bf16.msra.mxu1 %v648_v49 }
  0x6d   :  { %655 = vmatpush3.bf16.msra.mxu0 %v652_v53 }
  0x6e   :  { %657 = vmatprep.subr.bf16.mxu0 %v656_v55 }
  0x71   :  { %659 = vmatpush3.bf16.msra.mxu0 %v656_v55 }
  0x72   :  { %661 = vmatprep.subr.bf16.mxu0 %v660_v58 }
  0x75   :  { %663 = vmatpush3.bf16.msra.mxu0 %v660_v58 }
  0x76   :  { %665 = vmatprep.subr.bf16.mxu0 %v664_v61 }
  0x79   :  { %667 = vmatpush3.bf16.msra.mxu0 %v664_v61 }
  0x7a   :  { %669 = vmatprep.subr.bf16.mxu0 %v668_v0 }
  0x7d   :  { %671 = vmatpush3.bf16.msra.mxu0 %v668_v0 }
  0x7e   :  { %673 = vmatprep.subr.bf16.mxu0 %v672_v3 }
  0x81   :  { %675 = vmatpush3.bf16.msra.mxu0 %v672_v3 }
  0x82   :  { %677 = vmatprep.subr.bf16.mxu0 %v676_v6 }
  0x85   :  { %679 = vmatpush3.bf16.msra.mxu0 %v676_v6 }
  0x86   :  { %681 = vmatprep.subr.bf16.mxu0 %v680_v16 }
  0x89   :  { %683 = vmatpush3.bf16.msra.mxu0 %v680_v16 }
 0x13f   :  { %v517_v8 = vpop.f32.mrb[0].mxu0 }
 0x140   :  { %v179_v9 = vadd.f32 %v517_v8, %v426_v7  ;;  %v173_v10 = vpop.f32.mrb[1].mxu0 }
 0x141   :  { %v174_v11 = vadd.f32 %v426_v7, %v173_v10 }
 0x142   :  { %v183_v13 = vmax.f32 %v179_v9, 0.0 }
 0x143   :  { %v182_v12 = vmax.f32 %v174_v11, 0.0 }
 0x145   :  { %550 = vmatprep.mubr.f32.mxu1 %v182_v12 }
 0x146   :  { %551 = vmatmul.mubr.f32.vlgmr.msra.gmra.mrb[0].mxu1 %v183_v13 }
 0x219   :  { %v552_v18 = vpop.f32.mrb[0].mxu1 }
 0x21a   :  { %v279_v19 = vadd.f32 %v552_v18, %v427_v17  ;;  %v273_v20 = vpop.f32.mrb[1].mxu1 }
 0x21b   :  { %v274_v21 = vadd.f32 %v427_v17, %v273_v20 }
 0x21c   :  { %v283_v23 = vmax.f32 %v279_v19, 0.0 }
 0x21d   :  { %v282_v22 = vmax.f32 %v274_v21, 0.0 }
 0x21f   :  { %585 = vmatprep.mubr.f32.mxu0 %v282_v22 }
 0x220   :  { %586 = vmatmul.mubr.f32.vlgmr.msra.gmra.mrb[2].mxu0 %v283_v23 }
 0x2f3   :  { %v587_v27 = vpop.f32.mrb[2].mxu0 }
 0x2f4   :  { %v373_v28 = vpop.f32.mrb[3].mxu0  ;;  %v379_v30 = vadd.f32 %v587_v27, %v428_v26 }
 0x2f5   :  { %v374_v29 = vadd.f32 %v428_v26, %v373_v28 }
 0x2f6   :  { %v386_v32 = vsel %vm384_vm0, %v379_v30, -1e+30 }
 0x2f7   :  { %v385_v31 = vsel %vm384_vm0, %v374_v29, -1e+30 }
 0x2f8   :  { %387 = vmax.xlane.f32.xlu0 %v385_v31 }
 0x2fc   :  { %389 = vmax.xlane.f32.xlu0 %v386_v32 }
 0x385   :  { %v388_v33 = vpop.xlane.xlu0 %387 }
 0x386   :  { %v391_v34 = vsub.f32 %v385_v31, %v388_v33 }
 0x388   :  { %v393_v35 = vmul.f32 1.442695, %v391_v34 }
 0x389   :  { %v390_v36 = vpop.xlane.xlu0 %389 }
 0x38a   :  { %691 = vpow2.f32 %v393_v35  ;;  %v392_v37 = vsub.f32 %v386_v32, %v390_v36 }
 0x38c   :  { %v395_v38 = vmul.f32 1.442695, %v392_v37 }
 0x38e   :  { %693 = vpow2.f32 %v395_v38 }
 0x394   :  { %v692_v39 = vpop.eup %691 }
 0x395   :  { %397 = vadd.xlane.f32.xlu1 %v692_v39 }
 0x398   :  { %v694_v40 = vpop.eup %693 }
 0x399   :  { %399 = vadd.xlane.f32.xlu1 %v694_v40 }
 0x422   :  { %v398_v41 = vpop.xlane.xlu1 %397 }
 0x423   :  { %695 = vrcp.f32 %v398_v41 }
 0x426   :  { %v400_v42 = vpop.xlane.xlu1 %399 }
 0x427   :  { %697 = vrcp.f32 %v400_v42 }
 0x42d   :  { %v696_v43 = vpop.eup %695 }
 0x42e   :  { %v402_v44 = vmul.f32 %v696_v43, %v692_v39 }
 0x430   :  { %405 = vst [vmem:[#allocation10] sm:$0xff] %v402_v44 }
 0x431   :  { %v698_v45 = vpop.eup %697 }
 0x432   :  { %v404_v46 = vmul.f32 %v698_v45, %v694_v40 }
 0x434   :  { %406 = vst [vmem:[#allocation10 + $0x8] sm:$0xff] %v404_v46 }
 0x435   :  { %798 = shalt.err (!%p795_p8)
}
 0x436   :  { %s799_s11 = scalar_lea.hbm %s969_s7, 256 }
 0x437   :  { %p800_p9 = scmp.ne.s32.totalorder %s969_s7, %s799_s11  ;;  %p803_p10 = scmp.lt.u32.totalorder %s799_s11, %s969_s7 }
 0x439   :  { %p805_p11 = pnand %p803_p10, %p800_p9 }
 0x43b   :  { %808 = shalt.err (!%p805_p11)
}
 0x43c   :  { %418 = dma.vmem_to_hbm [thread:$0]  %s413_s6, 256, %s969_s7, [#allocation4], %s819_s13, %s819_s13, %s820_s14  }
 0x43d   :  { %815 = dma.done.wait [#allocation4], 256  }
 0x43e   :  { %816 = vsyncadd [#allocation4], 4294967040 }
 0x43f   :  { %422 = vsyncpa [#allocation3], 1 }
 0x440   :  { %423 = vsyncpa [#allocation6], 1 }
 0x441   :  { %424 = vsyncpa [#allocation9], 1 }
 0x442   :  { %425 = vsyncpa [#allocation4], 1 }

</bundles_post_ra>
